<compile_context>
chip_gen: v7x
topology: tpu7x:2x2x1
jax: 0.10.0
libtpu: 0.0.40
codegen_flags: <defaults>
</compile_context>

<pallas_src>
import functools

import jax
import jax.numpy as jnp
from jax.experimental import pallas as pl
from jax.experimental.pallas import tpu as pltpu


def _round_up(x: int, m: int) -> int:
    return (x + m - 1) // m * m


def _proj_kernel(x_ref, w_ref, b_ref, o_ref, acc_ref):
    # x_ref: (tm, tk)   w_ref: (tk, tn)   b_ref: (1, tn)
    # o_ref: (tm, tn)   acc_ref: (tm, tn) f32 scratch
    k = pl.program_id(2)

    @pl.when(k == 0)
    def _():
        acc_ref[...] = jnp.zeros_like(acc_ref)

    acc_ref[...] += jnp.dot(
        x_ref[...], w_ref[...], preferred_element_type=jnp.float32
    )

    @pl.when(k == pl.num_programs(2) - 1)
    def _():
        o_ref[...] = (acc_ref[...] + b_ref[...].astype(jnp.float32)).astype(
            o_ref.dtype
        )


def _pick_tiles(M: int, N: int, H: int):
    # M tile: full MXU rows when possible, sublane-aligned otherwise.
    tm = 256 if M >= 256 else _round_up(M, 8)
    # N tile: lane-dense multiple of 128, capped at 512.
    tn = 512 if N >= 512 else _round_up(N, 128)
    # K tile: keep the whole reduction resident for moderate H, otherwise
    # tile it (multiple of 128 satisfies both lane and sublane constraints).
    tk = H if H <= 2048 else 1024
    return tm, tn, tk


@functools.partial(jax.jit, static_argnames=())
def multimodal_projection(hidden_states, w_text, b_text, w_image, b_image):
    """hidden_states: [B, S, H]; w_text: [H, V]; w_image: [H, C] (pre-transposed)."""
    B, S, H = hidden_states.shape
    V = w_text.shape[1]
    C = w_image.shape[1]
    M = B * S
    N = V + C
    out_dtype = hidden_states.dtype

    tm, tn, tk = _pick_tiles(M, N, H)
    Mp = _round_up(M, tm)
    Np = _round_up(N, tn)
    Kp = _round_up(H, tk)

    # Flatten + fuse the two heads into one weight / bias.
    x = hidden_states.reshape(M, H)
    w = jnp.concatenate([w_text, w_image], axis=1)          # [H, N]
    b = jnp.concatenate([b_text, b_image], axis=0)           # [N]

    # Zero-pad to tile multiples (padding rows/cols are sliced off below and
    # padded K contributes zero to the accumulation).
    if Mp > M or Kp > H:
        x = jnp.pad(x, ((0, Mp - M), (0, Kp - H)))
    if Kp > H or Np > N:
        w = jnp.pad(w, ((0, Kp - H), (0, Np - N)))
    if Np > N:
        b = jnp.pad(b, (0, Np - N))
    b2 = b.reshape(1, Np)

    grid = (Mp // tm, Np // tn, Kp // tk)

    # Explicit scoped-VMEM budget: double-buffered x/w/b tiles + output tile
    # + f32 accumulator, with headroom; clamped to stay safe on v7x (64 MiB).
    in_bytes = jnp.dtype(x.dtype).itemsize
    out_bytes = jnp.dtype(out_dtype).itemsize
    est = (
        2 * (tm * tk + tk * tn + tn) * in_bytes
        + 2 * (tm * tn) * out_bytes
        + tm * tn * 4
    )
    vmem_limit = min(max(2 * est, 16 * 1024 * 1024), 48 * 1024 * 1024)

    out = pl.pallas_call(
        _proj_kernel,
        out_shape=jax.ShapeDtypeStruct((Mp, Np), out_dtype),
        grid_spec=pltpu.PrefetchScalarGridSpec(
            num_scalar_prefetch=0,
            grid=grid,
            in_specs=[
                pl.BlockSpec((tm, tk), lambda i, j, k: (i, k)),   # x tile
                pl.BlockSpec((tk, tn), lambda i, j, k: (k, j)),   # fused W tile
                pl.BlockSpec((1, tn), lambda i, j, k: (0, j)),    # fused bias tile
            ],
            out_specs=pl.BlockSpec((tm, tn), lambda i, j, k: (i, j)),
            scratch_shapes=[pltpu.VMEM((tm, tn), jnp.float32)],
        ),
        compiler_params=pltpu.CompilerParams(
            dimension_semantics=("parallel", "parallel", "arbitrary"),
            vmem_limit_bytes=vmem_limit,
        ),
    )(x, w, b2)

    text_flat = out[:M, :V]
    img_flat = out[:M, V:V + C]
    return {
        "text_logits": text_flat.reshape(B, S, V),
        "image_logits": img_flat.reshape(B, S, C),
    }


if __name__ == "__main__":
    # Small, module-consistent shapes.
    B, S, H = 2, 8, 32
    VOCAB = 256       # config.vocab_size
    CODEBOOK = 128    # config.mvot.codebook_size

    key = jax.random.PRNGKey(0)
    k_x, k_wt, k_bt, k_wi, k_bi = jax.random.split(key, 5)

    hidden_states = jax.random.normal(k_x, (B, S, H), dtype=jnp.float32)

    # Deterministic init mimicking nn.Linear's U(-1/sqrt(H), 1/sqrt(H)).
    bound = 1.0 / (H ** 0.5)
    # Stored pre-transposed as [H, out] (PyTorch keeps [out, H]).
    w_text = jax.random.uniform(k_wt, (H, VOCAB), minval=-bound, maxval=bound, dtype=jnp.float32)
    b_text = jax.random.uniform(k_bt, (VOCAB,), minval=-bound, maxval=bound, dtype=jnp.float32)
    w_image = jax.random.uniform(k_wi, (H, CODEBOOK), minval=-bound, maxval=bound, dtype=jnp.float32)
    b_image = jax.random.uniform(k_bi, (CODEBOOK,), minval=-bound, maxval=bound, dtype=jnp.float32)

    out = multimodal_projection(hidden_states, w_text, b_text, w_image, b_image)
    out = jax.tree_util.tree_map(jax.block_until_ready, out)

    # Reference check (plain JAX).
    ref_text = hidden_states @ w_text + b_text
    ref_img = hidden_states @ w_image + b_image
    assert out["text_logits"].shape == (B, S, VOCAB)
    assert out["image_logits"].shape == (B, S, CODEBOOK)
    assert jnp.allclose(out["text_logits"], ref_text, atol=1e-5, rtol=1e-5)
    assert jnp.allclose(out["image_logits"], ref_img, atol=1e-5, rtol=1e-5)

    print("KERNEL_OK")
</pallas_src>

<mosaic_0001>
module attributes {stable_mosaic.version = 11 : i64} {
  func.func @_proj_kernel(%arg0: i32, %arg1: i32, %arg2: i32, %arg3: memref<16x32xf32, #tpu.memory_space<vmem>>, %arg4: memref<32x384xf32, #tpu.memory_space<vmem>>, %arg5: memref<1x384xf32, #tpu.memory_space<vmem>>, %arg6: memref<16x384xf32, #tpu.memory_space<vmem>>, %arg7: memref<16x384xf32, #tpu.memory_space<vmem>>) attributes {dimension_semantics = [#tpu.dimension_semantics<parallel>, #tpu.dimension_semantics<parallel>, #tpu.dimension_semantics<arbitrary>], iteration_bounds = array<i64: 1, 1, 1>, scalar_prefetch = 0 : i64, scratch_operands = 1 : i64, tpu.core_type = #tpu.core_type<tc>, window_params = [{transform_indices = @transform_0, window_bounds = array<i64: 16, 32>}, {transform_indices = @transform_1, window_bounds = array<i64: 32, 384>}, {transform_indices = @transform_2, window_bounds = array<i64: 1, 384>}, {transform_indices = @transform_3, window_bounds = array<i64: 16, 384>}]} {
    %c0_i32 = arith.constant 0 : i32
    %0 = arith.cmpi eq, %arg2, %c0_i32 : i32
    %1 = arith.extui %0 : i1 to i32
    %c0_i32_0 = arith.constant 0 : i32
    %2 = arith.cmpi ne, %1, %c0_i32_0 : i32
    scf.if %2 {
      %cst_10 = arith.constant 0.000000e+00 : f32
      %12 = vector.broadcast %cst_10 : f32 to vector<16x384xf32>
      %c0_11 = arith.constant 0 : index
      %c0_12 = arith.constant 0 : index
      %13 = vector.load %arg7[%c0_11, %c0_12] : memref<16x384xf32, #tpu.memory_space<vmem>>, vector<16x384xf32>
      tpu.vector_store %arg7[%c0_11, %c0_12], %12 {strides = array<i32>} : memref<16x384xf32, #tpu.memory_space<vmem>>, vector<16x384xf32>,
    } else {
    }
    %c0 = arith.constant 0 : index
    %c0_1 = arith.constant 0 : index
    %3 = vector.load %arg7[%c0, %c0_1] : memref<16x384xf32, #tpu.memory_space<vmem>>, vector<16x384xf32>
    %c0_2 = arith.constant 0 : index
    %c0_3 = arith.constant 0 : index
    %4 = vector.load %arg3[%c0_2, %c0_3] : memref<16x32xf32, #tpu.memory_space<vmem>>, vector<16x32xf32>
    %c0_4 = arith.constant 0 : index
    %c0_5 = arith.constant 0 : index
    %5 = vector.load %arg4[%c0_4, %c0_5] : memref<32x384xf32, #tpu.memory_space<vmem>>, vector<32x384xf32>
    %cst = arith.constant dense<0.000000e+00> : vector<16x384xf32>
    %6 = tpu.matmul %4, %5, %cst {dimension_numbers = #tpu.dot_dimension_numbers<[1], [0], [0], [1], [0, 0, 1, 1], [], []>} : vector<16x32xf32>, vector<32x384xf32>, vector<16x384xf32> -> vector<16x384xf32>
    %7 = arith.addf %3, %6 : vector<16x384xf32>
    %c0_6 = arith.constant 0 : index
    %c0_7 = arith.constant 0 : index
    %8 = vector.load %arg7[%c0_6, %c0_7] : memref<16x384xf32, #tpu.memory_space<vmem>>, vector<16x384xf32>
    tpu.vector_store %arg7[%c0_6, %c0_7], %7 {strides = array<i32>} : memref<16x384xf32, #tpu.memory_space<vmem>>, vector<16x384xf32>,
    %c0_i32_8 = arith.constant 0 : i32
    %9 = arith.cmpi eq, %arg2, %c0_i32_8 : i32
    %10 = arith.extui %9 : i1 to i32
    %c0_i32_9 = arith.constant 0 : i32
    %11 = arith.cmpi ne, %10, %c0_i32_9 : i32
    scf.if %11 {
      %c0_10 = arith.constant 0 : index
      %c0_11 = arith.constant 0 : index
      %12 = vector.load %arg7[%c0_10, %c0_11] : memref<16x384xf32, #tpu.memory_space<vmem>>, vector<16x384xf32>
      %c0_12 = arith.constant 0 : index
      %c0_13 = arith.constant 0 : index
      %13 = vector.load %arg5[%c0_12, %c0_13] : memref<1x384xf32, #tpu.memory_space<vmem>>, vector<1x384xf32>
      %14 = vector.broadcast %13 : vector<1x384xf32> to vector<16x384xf32>
      %15 = arith.addf %12, %14 : vector<16x384xf32>
      %c0_14 = arith.constant 0 : index
      %c0_15 = arith.constant 0 : index
      %16 = vector.load %arg6[%c0_14, %c0_15] : memref<16x384xf32, #tpu.memory_space<vmem>>, vector<16x384xf32>
      tpu.vector_store %arg6[%c0_14, %c0_15], %15 {strides = array<i32>} : memref<16x384xf32, #tpu.memory_space<vmem>>, vector<16x384xf32>,
    } else {
    }
    return
  }
  func.func @transform_0(%arg0: i32, %arg1: i32, %arg2: i32) -> (i32, i32) {
    %c0_i32 = arith.constant 0 : i32
    return %arg0, %arg2 : i32, i32
  }
  func.func @transform_1(%arg0: i32, %arg1: i32, %arg2: i32) -> (i32, i32) {
    %c0_i32 = arith.constant 0 : i32
    return %arg2, %arg1 : i32, i32
  }
  func.func @transform_2(%arg0: i32, %arg1: i32, %arg2: i32) -> (i32, i32) {
    %c0_i32 = arith.constant 0 : i32
    %c0_i32_0 = arith.constant 0 : i32
    return %c0_i32, %arg1 : i32, i32
  }
  func.func @transform_3(%arg0: i32, %arg1: i32, %arg2: i32) -> (i32, i32) {
    %c0_i32 = arith.constant 0 : i32
    return %arg0, %arg1 : i32, i32
  }
}

</mosaic_0001>

<bundles_post_ra>
// kernel: multimodal_projection.1
= control target key start
LH: loop header
LB: loop body
LE: loop exit
PB: predicated region body
PF: predicated region fallthrough
CT: control target
= control target key end

     0   :  { %v295_v3 = vmov 0.0   ;;  %vm44_vm0 = vcmask 261120   ;;  %v226_v21 = vlaneseq  ;;  %s379_s1 = inlined_call_operand.vmem [shape: f32[32,384], index: 1, kind: input, shape index: {}]   ;;  %s380_s0 = inlined_call_operand.vmem [shape: f32[16,32], index: 0, kind: input, shape index: {}]   ;;  %s381_s2 = inlined_call_operand.vmem [shape: f32[1,384], index: 2, kind: input, shape index: {}]   ;;  %s382_s3 = inlined_call_operand.vmem [shape: f32[16,384], index: 3, kind: output, shape index: {}]  }
   0x1   :  { %v33_v0 = vld [vmem:[%s379_s1 + $0x8] sm:$0xff]  ;;  %v36_v1 = vld [vmem:[%s379_s1 + $0x20] sm:$0xff]  ;;  %115 = vmatprep.mubr.f32.mxu0 %v295_v3  ;;  %v35_v5 = vld [vmem:[%s379_s1 + $0x18] sm:$0xff] }
   0x2   :  { %v32_v2 = vld [vmem:[%s379_s1] sm:$0xff]  ;;  %v278_v4 = vpack.c.bf16 %v36_v1, %v33_v0  ;;  %v34_v6 = vld [vmem:[%s379_s1 + $0x10] sm:$0xff]  ;;  %v37_v7 = vld [vmem:[%s379_s1 + $0x28] sm:$0xff]  ;;  %v227_v22 = vshrl.u32 %v226_v21, 7 }
   0x3   :  { %v280_v8 = vpack.c.bf16 %v35_v5, %v32_v2  ;;  %v286_v9 = vpack.c.bf16 %v37_v7, %v34_v6  ;;  %v39_v10 = vld [vmem:[%s379_s1 + $0x38] sm:$0xff]  ;;  %v42_v11 = vld [vmem:[%s379_s1 + $0x50] sm:$0xff]  ;;  %v41_v14 = vld [vmem:[%s379_s1 + $0x48] sm:$0xff] }
   0x4   :  { %v38_v12 = vld [vmem:[%s379_s1 + $0x30] sm:$0xff]  ;;  %279 = vmatprep.subr.bf16.mxu0 %v278_v4  ;;  %v282_v13 = vpack.c.bf16 %v42_v11, %v39_v10  ;;  %v40_v15 = vld [vmem:[%s379_s1 + $0x40] sm:$0xff]  ;;  %v43_v16 = vld [vmem:[%s379_s1 + $0x58] sm:$0xff]  ;;  %v228_v23 = vsub.s32 0, %v227_v22  ;;  %v232_v25 = vsub.s32 1, %v227_v22  ;;  %v236_v26 = vsub.s32 2, %v227_v22 }
   0x5   :  { %281 = vmatpush1.bf16.msra.mxu0 %v280_v8  ;;  %287 = vmatprep.subr.bf16.mxu1 %v286_v9  ;;  %v284_v17 = vpack.c.bf16 %v41_v14, %v38_v12  ;;  %v290_v18 = vpack.c.bf16 %v43_v16, %v40_v15  ;;  %v30_v19 = vld [vmem:[%s380_s0] sm:$0xff]  ;;  %v31_v20 = vld [vmem:[%s380_s0 + $0x8] sm:$0xff] }
   0x6   :  { %283 = vmatprep.subr.bf16.mxu0 %v282_v13  ;;  %289 = vmatpush3.bf16.msra.mxu1 %v286_v9  ;;  %v224_v24 = vld [vmem:[%s381_s2] sm:$0x7] }
   0x7   :  { %291 = vmatprep.subr.bf16.mxu1 %v290_v18  ;;  %275 = vmatprep.mubr.msk.f32.mxu1 %vm44_vm0, %v30_v19  ;;  %v229_v27 = vrot.slane %v224_v24, %v228_v23  ;;  %v233_v28 = vrot.slane %v224_v24, %v232_v25  ;;  %v237_v29 = vrot.slane %v224_v24, %v236_v26 }
   0x9   :  { %285 = vmatpush1.bf16.msra.mxu0 %v284_v17 }
   0xa   :  { %293 = vmatpush3.bf16.msra.mxu1 %v290_v18 }
   0xc   :  { %257 = vmatmul.mubr.msk.f32.vlgmr.msra.gmra.mrb[0].mxu0 %vm44_vm0, %v30_v19 }
   0xd   :  { %121 = vmatprep.mubr.f32.mxu0 %v295_v3  ;;  %276 = vmatmul.mubr.msk.f32.vlgmr.msra.gmra.mrb[0].mxu1 %vm44_vm0, %v31_v20 }
  0x10   :  { %258 = vmatmul.mubr.msk.f32.gmra.mrb[2].mxu0 %vm44_vm0, %v31_v20 }
  0xdf   :  { %v117_v30 = vpop.f32.mrb[0].mxu0 }
  0xe0   :  { %v241_v31 = vadd.f32 %v229_v27, %v117_v30  ;;  %v119_v32 = vpop.f32.mrb[1].mxu0  ;;  %v277_v33 = vpop.f32.mrb[0].mxu1 }
  0xe1   :  { %v242_v34 = vadd.f32 %v233_v28, %v119_v32  ;;  %v246_v35 = vadd.f32 %v277_v33, %v237_v29  ;;  %v194_v36 = vpop.f32.mrb[1].mxu1 }
  0xe2   :  { %247 = vst [vmem:[%s382_s3] sm:$0xff] %v241_v31  ;;  %v243_v37 = vadd.f32 %v237_v29, %v194_v36 }
  0xe3   :  { %248 = vst [vmem:[%s382_s3 + $0x8] sm:$0xff] %v242_v34  ;;  %252 = vst [vmem:[%s382_s3 + $0x28] sm:$0xff] %v246_v35  ;;  %v123_v38 = vpop.f32.mrb[2].mxu0 }
  0xe4   :  { %v244_v39 = vadd.f32 %v229_v27, %v123_v38  ;;  %249 = vst [vmem:[%s382_s3 + $0x10] sm:$0xff] %v243_v37  ;;  %v125_v40 = vpop.f32.mrb[3].mxu0 }
  0xe5   :  { %v245_v41 = vadd.f32 %v233_v28, %v125_v40 }
  0xe6   :  { %250 = vst [vmem:[%s382_s3 + $0x18] sm:$0xff] %v244_v39 }
  0xe7   :  { %251 = vst [vmem:[%s382_s3 + $0x20] sm:$0xff] %v245_v41 }

</bundles_post_ra>
